<compile_context>
chip_gen: v7x
topology: tpu7x:2x2x1
jax: 0.10.0
libtpu: 0.0.40
codegen_flags: <defaults>
</compile_context>

<pallas_src>
import jax
import jax.numpy as jnp
import numpy as np
from jax.experimental import pallas as pl
from jax.experimental.pallas import tpu as pltpu

NUM_PARTS = 6
LANE = 128


def part_head_kernel(pooled_ref, wred_ref, affine_ref, predict_ref, acc_ref):
    # pooled_ref : (B, tk)      bf16  pooled activations for part p, K-slice k
    # wred_ref   : (tk, Cout)   bf16  per-part 1x1-conv weight K-slice (W.T)
    # affine_ref : (2, Cout)    f32   [0] = folded BN scale, [1] = folded bias
    # predict_ref: (B, Cout)    f32   slice p of the concatenated predict
    # acc_ref    : (B, Cout)    f32   Cin-reduction accumulator (VMEM scratch)
    k = pl.program_id(1)

    @pl.when(k == 0)
    def _():
        acc_ref[...] = jnp.zeros_like(acc_ref)

    # 1x1 conv (no bias) on a pooled 1x1 spatial input == plain matmul.
    # bf16 x bf16 inputs, f32 accumulation on the MXU.
    acc_ref[...] += jnp.dot(pooled_ref[...], wred_ref[...],
                            preferred_element_type=jnp.float32)

    @pl.when(k == pl.num_programs(1) - 1)
    def _():
        # BatchNorm2d (eval mode, running stats folded into scale/bias) + ReLU.
        scale = affine_ref[0:1, :]          # (1, Cout)
        bias = affine_ref[1:2, :]           # (1, Cout)
        feat = jnp.maximum(acc_ref[...] * scale + bias, 0.0)
        predict_ref[...] = feat.astype(predict_ref.dtype)


def part_forward(x_nchw, w_red_stack, bn_scale, bn_bias, w_cls_t, *,
                 training=False, tk=None):
    """Part head forward.

    x_nchw      : (B, Cin, H, W) float32, H % 6 == 0   (PyTorch NCHW input)
    w_red_stack : (6, Cin, Cout)  per-part reduction 1x1-conv weights (W.T)
    bn_scale    : (6, 1, Cout)    per-part folded BN scale
    bn_bias     : (6, 1, Cout)    per-part folded BN bias
    w_cls_t     : (Cout, NC)      classifier_1 weight, transposed
    """
    B, Cin, H, W = x_nchw.shape
    assert H % NUM_PARTS == 0, "exact AdaptiveAvgPool2d((6,1)) needs H % 6 == 0"
    hbin = H // NUM_PARTS
    Cout = w_red_stack.shape[2]
    assert Cout % LANE == 0, "Cout must be a multiple of 128 lanes"

    # Large K tile: nk == 1 for Cin <= 2048 (kills per-step grid overhead; the
    # 2048x2048 bf16 weight tile, double buffered, is 16 MiB -> fits all gens).
    if tk is None:
        tk = min(Cin, 2048)
    assert Cin % tk == 0 and tk % LANE == 0
    nk = Cin // tk

    # AdaptiveAvgPool2d((6,1)) in plain XLA -> (6, B, Cin); only the pooled
    # rows go through the kernel's VMEM pipeline.
    pooled = x_nchw.reshape(B, Cin, NUM_PARTS, hbin, W).mean(axis=(3, 4))
    pooled = jnp.transpose(pooled, (2, 0, 1)).astype(jnp.bfloat16)   # (6,B,Cin)

    # bf16 weight stream; f32 accumulation happens inside the kernel.
    w_red_bf16 = w_red_stack.astype(jnp.bfloat16)

    # Single stacked BN affine input: (6, 2, Cout) f32 -> one tiny DMA per part.
    affine = jnp.stack(
        [bn_scale.reshape(NUM_PARTS, Cout).astype(jnp.float32),
         bn_bias.reshape(NUM_PARTS, Cout).astype(jnp.float32)],
        axis=1)                                                      # (6,2,Cout)

    # Explicit VMEM budget: double-buffered inputs/outputs + f32 accumulator,
    # with headroom for (8,128) tile rounding and Mosaic internal scratch.
    vmem_bytes = (
        2 * (B * tk * 2)            # pooled tiles (bf16, double buffered)
        + 2 * (tk * Cout * 2)       # w_red tiles (bf16, double buffered)
        + 2 * (8 * Cout * 4)        # affine tiles (f32, sublane-padded 2->8)
        + (B * Cout * 4)            # accumulator scratch (f32)
        + 2 * (B * Cout * 4)        # predict out tiles (f32)
    )
    # Clamp below the v7x 64 MiB physical VMEM to leave compiler headroom.
    vmem_limit = min(int(1.5 * vmem_bytes) + (4 << 20), 48 << 20)

    predict = pl.pallas_call(
        part_head_kernel,
        out_shape=jax.ShapeDtypeStruct((B, NUM_PARTS * Cout), jnp.float32),
        grid_spec=pltpu.PrefetchScalarGridSpec(
            num_scalar_prefetch=0,
            grid=(NUM_PARTS, nk),               # (part, Cin-reduction)
            in_specs=[
                # pooled rows for part p, K-slice k
                pl.BlockSpec((None, B, tk),    lambda p, k: (p, 0, k)),
                # per-part reduction weight K-slice (the dominant HBM stream;
                # keep default double buffering — the pipeline is DMA-limited,
                # a third buffer would only burn VMEM)
                pl.BlockSpec((None, tk, Cout), lambda p, k: (p, k, 0)),
                # stacked folded-BN scale/bias for part p
                pl.BlockSpec((None, 2, Cout),  lambda p, k: (p, 0, 0)),
            ],
            # each part writes its own lane-dense column block of `predict`
            out_specs=pl.BlockSpec((B, Cout),  lambda p, k: (0, p)),
            scratch_shapes=[pltpu.VMEM((B, Cout), jnp.float32)],
        ),
        compiler_params=pltpu.CompilerParams(
            # parts write disjoint output blocks -> shardable across v7x's two
            # TensorCores; the Cin reduction axis is last and "arbitrary".
            dimension_semantics=("parallel", "arbitrary"),
            vmem_limit_bytes=vmem_limit,
        ),
    )(pooled, w_red_bf16, affine)

    if not training:
        # Eval: no classifier work at all (no w_cls fetch, no cls output).
        return predict

    # Training: classifier_1 applied to every part feature — one small batched
    # f32 matmul in plain XLA on the kernel output (6*B rows, single weight
    # fetch, off the kernel's critical path).
    feats = jnp.transpose(predict.reshape(B, NUM_PARTS, Cout), (1, 0, 2))
    cls = jnp.einsum("pbc,cn->pbn", feats, w_cls_t.astype(jnp.float32))
    return [cls[p] for p in range(NUM_PARTS)], None


def reference(x_nchw, w_red_stack, bn_scale, bn_bias, w_cls_t):
    """Plain-JAX reference matching the PyTorch forward (with the same bf16
    input/weight rounding the kernel applies, f32 accumulation)."""
    B, Cin, H, W = x_nchw.shape
    hbin = H // NUM_PARTS
    pooled = x_nchw.reshape(B, Cin, NUM_PARTS, hbin, W).mean(axis=(3, 4))
    pooled = jnp.transpose(pooled, (2, 0, 1))                       # (6, B, Cin)
    pooled = pooled.astype(jnp.bfloat16).astype(jnp.float32)
    w_red = w_red_stack.astype(jnp.bfloat16).astype(jnp.float32)
    feats = []
    for p in range(NUM_PARTS):
        f = pooled[p] @ w_red[p]                                    # (B, Cout)
        f = jnp.maximum(f * bn_scale[p] + bn_bias[p], 0.0)
        feats.append(f)
    predict = jnp.concatenate(feats, axis=1)                        # (B, 6*Cout)
    feats_s = jnp.stack(feats, axis=0)                              # (6, B, Cout)
    cls = jnp.einsum("pbc,cn->pbn", feats_s, w_cls_t.astype(jnp.float32))
    return predict, cls                                             # (6, B, NC)


if __name__ == "__main__":
    # Small shapes consistent with the module structure (scaled down from
    # Cin = Cout = 2048, num_classes ~ 751).
    B, Cin, Cout, H, W, NC = 2, 512, 512, 12, 4, 32
    eps = 1e-5

    key = jax.random.PRNGKey(0)
    kx, kw, kg, kc = jax.random.split(key, 4)

    # Backbone output feature map (stand-in for self.base(x)).
    x = jax.random.normal(kx, (B, Cin, H, W), dtype=jnp.float32)

    # reduction = Conv2d(Cin, Cout, 1, bias=False) + BatchNorm2d + ReLU
    #   conv: kaiming_normal_(mode='fan_in')  -> std = sqrt(2 / Cin)
    #   BN:   gamma ~ N(1, 0.02), beta = 0, running_mean = 0, running_var = 1
    w_conv = jax.random.normal(kw, (Cout, Cin), dtype=jnp.float32) * np.sqrt(2.0 / Cin)
    gamma = 1.0 + 0.02 * jax.random.normal(kg, (Cout,), dtype=jnp.float32)
    beta = jnp.zeros((Cout,), jnp.float32)
    running_mean = jnp.zeros((Cout,), jnp.float32)
    running_var = jnp.ones((Cout,), jnp.float32)

    # copy.deepcopy in __init__: all 6 reduction branches share identical init.
    w_red_stack = jnp.tile(w_conv.T[None], (NUM_PARTS, 1, 1))          # (6,Cin,Cout)
    scale = gamma / jnp.sqrt(running_var + eps)
    bias = beta - running_mean * scale
    bn_scale = jnp.tile(scale[None, None, :], (NUM_PARTS, 1, 1))       # (6,1,Cout)
    bn_bias = jnp.tile(bias[None, None, :], (NUM_PARTS, 1, 1))         # (6,1,Cout)

    # classifier_1: Linear(Cout, NC, bias=False), weight ~ N(0, 0.001)
    # (forward applies classifier_1 to all six parts, as in the original code).
    w_cls = 0.001 * jax.random.normal(kc, (NC, Cout), dtype=jnp.float32)
    w_cls_t = w_cls.T                                                   # (Cout, NC)

    # Eval-mode forward (returns `predict`); default tk = Cin -> nk == 1.
    predict = jax.block_until_ready(
        part_forward(x, w_red_stack, bn_scale, bn_bias, w_cls_t,
                     training=False))
    # Also exercise the K-reduction path (nk > 1).
    predict_tk = jax.block_until_ready(
        part_forward(x, w_red_stack, bn_scale, bn_bias, w_cls_t,
                     training=False, tk=256))
    # Training-mode forward (returns the 6 classifier scores).
    cls_list, _ = part_forward(x, w_red_stack, bn_scale, bn_bias, w_cls_t,
                               training=True)
    cls_stack = jax.block_until_ready(jnp.stack(cls_list, axis=0))

    ref_predict, ref_cls = reference(x, w_red_stack, bn_scale, bn_bias, w_cls_t)

    assert predict.shape == (B, NUM_PARTS * Cout)
    assert cls_stack.shape == (NUM_PARTS, B, NC)
    np.testing.assert_allclose(np.asarray(predict), np.asarray(ref_predict),
                               rtol=3e-3, atol=3e-3)
    np.testing.assert_allclose(np.asarray(predict_tk), np.asarray(ref_predict),
                               rtol=3e-3, atol=3e-3)
    np.testing.assert_allclose(np.asarray(cls_stack), np.asarray(ref_cls),
                               rtol=3e-3, atol=3e-3)
    print("KERNEL_OK")
</pallas_src>

<mosaic_0001>
module attributes {stable_mosaic.version = 11 : i64} {
  func.func @part_head_kernel(%arg0: i32, %arg1: i32, %arg2: memref<1x2x512xbf16, #tpu.memory_space<vmem>>, %arg3: memref<1x512x512xbf16, #tpu.memory_space<vmem>>, %arg4: memref<1x2x512xf32, #tpu.memory_space<vmem>>, %arg5: memref<2x512xf32, #tpu.memory_space<vmem>>, %arg6: memref<2x512xf32, #tpu.memory_space<vmem>>) attributes {dimension_semantics = [#tpu.dimension_semantics<parallel>, #tpu.dimension_semantics<arbitrary>], iteration_bounds = array<i64: 6, 1>, scalar_prefetch = 0 : i64, scratch_operands = 1 : i64, tpu.core_type = #tpu.core_type<tc>, window_params = [{transform_indices = @transform_0, window_bounds = array<i64: 1, 2, 512>}, {transform_indices = @transform_1, window_bounds = array<i64: 1, 512, 512>}, {transform_indices = @transform_2, window_bounds = array<i64: 1, 2, 512>}, {transform_indices = @transform_3, window_bounds = array<i64: 2, 512>}]} {
    %c0_i32 = arith.constant 0 : i32
    %0 = arith.cmpi eq, %arg1, %c0_i32 : i32
    %1 = arith.extui %0 : i1 to i32
    %c0_i32_0 = arith.constant 0 : i32
    %2 = arith.cmpi ne, %1, %c0_i32_0 : i32
    scf.if %2 {
      %cst_12 = arith.constant 0.000000e+00 : f32
      %14 = vector.broadcast %cst_12 : f32 to vector<2x512xf32>
      %c0_13 = arith.constant 0 : index
      %c0_14 = arith.constant 0 : index
      %15 = vector.load %arg6[%c0_13, %c0_14] : memref<2x512xf32, #tpu.memory_space<vmem>>, vector<2x512xf32>
      tpu.vector_store %arg6[%c0_13, %c0_14], %14 {strides = array<i32>} : memref<2x512xf32, #tpu.memory_space<vmem>>, vector<2x512xf32>,
    } else {
    }
    %c0 = arith.constant 0 : index
    %c0_1 = arith.constant 0 : index
    %3 = vector.load %arg6[%c0, %c0_1] : memref<2x512xf32, #tpu.memory_space<vmem>>, vector<2x512xf32>
    %c0_2 = arith.constant 0 : index
    %c0_3 = arith.constant 0 : index
    %c0_4 = arith.constant 0 : index
    %4 = vector.load %arg2[%c0_2, %c0_3, %c0_4] : memref<1x2x512xbf16, #tpu.memory_space<vmem>>, vector<1x2x512xbf16>
    %5 = vector.shape_cast %4 : vector<1x2x512xbf16> to vector<2x512xbf16>
    %c0_5 = arith.constant 0 : index
    %c0_6 = arith.constant 0 : index
    %c0_7 = arith.constant 0 : index
    %6 = vector.load %arg3[%c0_5, %c0_6, %c0_7] : memref<1x512x512xbf16, #tpu.memory_space<vmem>>, vector<1x512x512xbf16>
    %7 = vector.shape_cast %6 : vector<1x512x512xbf16> to vector<512x512xbf16>
    %cst = arith.constant dense<0.000000e+00> : vector<2x512xf32>
    %8 = tpu.matmul %5, %7, %cst {dimension_numbers = #tpu.dot_dimension_numbers<[1], [0], [0], [1], [0, 0, 1, 1], [], []>} : vector<2x512xbf16>, vector<512x512xbf16>, vector<2x512xf32> -> vector<2x512xf32>
    %9 = arith.addf %3, %8 : vector<2x512xf32>
    %c0_8 = arith.constant 0 : index
    %c0_9 = arith.constant 0 : index
    %10 = vector.load %arg6[%c0_8, %c0_9] : memref<2x512xf32, #tpu.memory_space<vmem>>, vector<2x512xf32>
    tpu.vector_store %arg6[%c0_8, %c0_9], %9 {strides = array<i32>} : memref<2x512xf32, #tpu.memory_space<vmem>>, vector<2x512xf32>,
    %c0_i32_10 = arith.constant 0 : i32
    %11 = arith.cmpi eq, %arg1, %c0_i32_10 : i32
    %12 = arith.extui %11 : i1 to i32
    %c0_i32_11 = arith.constant 0 : i32
    %13 = arith.cmpi ne, %12, %c0_i32_11 : i32
    scf.if %13 {
      %c0_12 = arith.constant 0 : index
      %c0_13 = arith.constant 0 : index
      %c0_14 = arith.constant 0 : index
      %14 = vector.load %arg4[%c0_12, %c0_13, %c0_14] : memref<1x2x512xf32, #tpu.memory_space<vmem>>, vector<1x1x512xf32>
      %15 = vector.shape_cast %14 : vector<1x1x512xf32> to vector<1x512xf32>
      %c0_15 = arith.constant 0 : index
      %c1 = arith.constant 1 : index
      %c0_16 = arith.constant 0 : index
      %16 = vector.load %arg4[%c0_15, %c1, %c0_16] : memref<1x2x512xf32, #tpu.memory_space<vmem>>, vector<1x1x512xf32>
      %17 = vector.shape_cast %16 : vector<1x1x512xf32> to vector<1x512xf32>
      %c0_17 = arith.constant 0 : index
      %c0_18 = arith.constant 0 : index
      %18 = vector.load %arg6[%c0_17, %c0_18] : memref<2x512xf32, #tpu.memory_space<vmem>>, vector<2x512xf32>
      %19 = vector.broadcast %15 : vector<1x512xf32> to vector<2x512xf32>
      %20 = arith.mulf %18, %19 : vector<2x512xf32>
      %21 = vector.broadcast %17 : vector<1x512xf32> to vector<2x512xf32>
      %22 = arith.addf %20, %21 : vector<2x512xf32>
      %cst_19 = arith.constant 0.000000e+00 : f32
      %23 = vector.broadcast %cst_19 : f32 to vector<2x512xf32>
      %24 = arith.maximumf %22, %23 : vector<2x512xf32>
      %c0_20 = arith.constant 0 : index
      %c0_21 = arith.constant 0 : index
      %25 = vector.load %arg5[%c0_20, %c0_21] : memref<2x512xf32, #tpu.memory_space<vmem>>, vector<2x512xf32>
      tpu.vector_store %arg5[%c0_20, %c0_21], %24 {strides = array<i32>} : memref<2x512xf32, #tpu.memory_space<vmem>>, vector<2x512xf32>,
    } else {
    }
    return
  }
  func.func @transform_0(%arg0: i32, %arg1: i32) -> (i32, i32, i32) {
    %c0_i32 = arith.constant 0 : i32
    %c0_i32_0 = arith.constant 0 : i32
    return %arg0, %c0_i32, %arg1 : i32, i32, i32
  }
  func.func @transform_1(%arg0: i32, %arg1: i32) -> (i32, i32, i32) {
    %c0_i32 = arith.constant 0 : i32
    %c0_i32_0 = arith.constant 0 : i32
    return %arg0, %arg1, %c0_i32 : i32, i32, i32
  }
  func.func @transform_2(%arg0: i32, %arg1: i32) -> (i32, i32, i32) {
    %c0_i32 = arith.constant 0 : i32
    %c0_i32_0 = arith.constant 0 : i32
    %c0_i32_1 = arith.constant 0 : i32
    return %arg0, %c0_i32, %c0_i32_0 : i32, i32, i32
  }
  func.func @transform_3(%arg0: i32, %arg1: i32) -> (i32, i32) {
    %c0_i32 = arith.constant 0 : i32
    %c0_i32_0 = arith.constant 0 : i32
    return %c0_i32, %arg0 : i32, i32
  }
}

</mosaic_0001>

<bundles_post_ra>
// kernel: tpu_custom_call.1
= control target key start
LH: loop header
LB: loop body
LE: loop exit
PB: predicated region body
PF: predicated region fallthrough
CT: control target
= control target key end

     0   :  { %s2528_s0 = inlined_call_operand.hbm [shape: bf16[6,2,512], index: 0, kind: input, shape index: {}]   ;;  %s2529_s1 = inlined_call_operand.hbm [shape: bf16[6,512,512], index: 1, kind: input, shape index: {}]   ;;  %s2530_s2 = inlined_call_operand.hbm [shape: f32[6,2,512], index: 2, kind: input, shape index: {}]   ;;  %s2531_s3 = inlined_call_operand.hbm [shape: f32[2,3072], index: 3, kind: output, shape index: {}]  }
   0x1   :  { %2538 = sst [smem:[#allocation16_spill]] %s2528_s0 }
   0x2   :  { %2539 = sst [smem:[#allocation17_spill]] %s2529_s1 }
   0x3   :  { %8 = vsyncpa [#allocation4], 0 }
   0x4   :  { %10 = vsyncpa [#allocation4 + $0x1], 0 }
   0x5   :  { %11 = vsyncpa [#allocation7], 0 }
   0x6   :  { %13 = vsyncpa [#allocation7 + $0x1], 0 }
   0x7   :  { %14 = vsyncpa [#allocation5], 0 }
   0x8   :  { %16 = vsyncpa [#allocation5 + $0x1], 0  ;;  %s2140_s12 = smov 0   ;;  %s2142_s13 = smov 0  }
   0x9   :  { %s2144_s14 = smov 0   ;;  %s2146_s15 = smov 0  }
   0xa   :  { %s2148_s16 = smov 0   ;;  %s2150_s17 = smov 0  }
   0xb LB: > { %2540 = sst [smem:[#allocation13_spill]] %s2098_s14  ;;  %s2171_s18 = sadd.s32 4294967295, %s2110_s17   ;;  %s2110_s17 = sphi %s2150_s17, %s22_s17   ;;  %s2106_s16 = sphi %s2148_s16, %s2565_s16   ;;  %s2102_s15 = sphi %s2146_s15, %s2564_s15   ;;  %s2098_s14 = sphi %s2144_s14, %s2560_s14   ;;  %s2094_s13 = sphi %s2142_s13, %s2563_s13   ;;  %s2090_s12 = sphi %s2140_s12, %s2562_s12  }
   0xc   : > { %s1502_s19 = sadd.s32 4294967294, %s2110_s17   ;;  %s34_s20 = sadd.s32 1, %s2106_s16 }
   0xd   : > { %s43_s21 = sadd.s32 1, %s2098_s14  ;;  %p36_p0 = scmp.ge.s32.totalorder %s34_s20, 6 }
   0xe   : > { %p50_p1 = scmp.ne.s32.totalorder %s2098_s14, %s2094_s13  ;;  %p51_p2 = scmp.eq.s32.totalorder %s2110_s17, 0 }
   0xf   : > { %p56_p3 = scmp.ne.s32.totalorder %s2094_s13, %s2090_s12  ;;  %s2567_s20 = smov (%p36_p0, %s34_s20), 0 }
  0x10   : > { %2541 = sst [smem:[#allocation14_spill]] %s2567_s20  ;;  %p2183_p4 = por %p51_p2, %p50_p1 }
  0x11   : > { %p57_p5 = scmp.eq.s32.totalorder %s2171_s18, 0  ;;  %s38_s23 = ssub.s32 %s2106_s16, %s2567_s20 }
  0x12   : > { %p134_p6 = scmp.eq.s32.totalorder %s2171_s18, 5  ;;  %p41_p7 = scmp.eq.s32.totalorder %s38_s23, 0 }
  0x13   : > { %p2191_p8 = por %p57_p5, %p56_p3  ;;  %p140_p10 = scmp.eq.s32.totalorder %s1502_s19, 5 }
  0x14   : > { %p2195_p9 = por %p134_p6, %p50_p1  ;;  %p1688_p12 = scmp.lt.s32.totalorder %s2110_s17, 6 }
  0x15   : > { %s2543_s24 = scalar_select %p2191_p8, 1, 0 }
  0x16   : > { %s2544_s25 = scalar_select %p2195_p9, 1, 0 }
  0x17   : > { %s2200_s26 = scalar_select %p41_p7, %s2098_s14, %s43_s21  }
  0x18   : > { %p2202_p11 = por %p140_p10, %p56_p3  ;;  %s2208_s28 = sand.u32 1, %s2098_s14  }
  0x19   : > { %2545 = sst [smem:[#allocation15_spill]] %s2200_s26  ;;  %s181_s29 = sand.u32 1, %s2110_s17  }
  0x1a   : > { %s2546_s27 = scalar_select %p2202_p11, 1, 0 }
  0x1b   : > { %s1508_s30 = sshll.u32 %s2208_s28, 10  ;;  %p2214_p13 = pnand %p1688_p12, %p2183_p4 }
  0x1c   : > { %s1655_s5 = sshll.u32 %s2106_s16, 14  ;;  %s2548_s1 = sld [smem:[#allocation17_spill]] }
  0x1d   : > { %s2547_s4 = scalar_select %p2214_p13, 1, 0 }
  0x1e   : > { %s185_s9 = scalar_lea.vmem [#allocation6], %s1508_s30  ;;  %s2226_s11 = scalar_lea.sflag [#allocation7], %s181_s29 }
  0x1f   : > { %s195_s10 = sshll.u32 %s185_s9, 4  ;;  %p2232_p1 = pneg %p2214_p13  ;;  %s2224_s10 = int_to_ptr.vmem [resolvable:$true] %s195_s10 }
  0x22   : > { %s2222_s8 = scalar_lea.hbm %s2548_s1, %s1655_s5  ;;  %s1939_s30 = scalar_lea.hbm %s2548_s1, 98304 }
  0x23   : > { %s1934_s19 = scalar_lea.hbm %s2222_s8, 16384  ;;  %p1940_p4 = scmp.lt.u32.totalorder %s2222_s8, %s2548_s1 }
  0x24   : > { %p1935_p0 = scmp.ne.s32.totalorder %s2222_s8, %s1934_s19  ;;  %p1941_p5 = scmp.lt.u32.totalorder %s1939_s30, %s1934_s19 }
  0x25   : > { %p1943_p7 = scmp.lt.u32.totalorder %s1934_s19, %s2222_s8 }
  0x26   : > { %p1937_p2 = pnand %p2232_p1, %p1935_p0  ;;  %p1942_p6 = por %p1941_p5, %p1940_p4 }
  0x28   : > { %p1938_p3 = pneg %p1937_p2  ;;  %p1944_p10 = por %p1943_p7, %p1942_p6 }
  0x2a   : > { %p1945_p12 = pnand %p1944_p10, %p1938_p3 }
  0x2c   : > { %1948 = shalt.err (!%p1945_p12)
}
  0x2d   : > { %s1949_s29 = scalar_lea.vmem %s2224_s10, 16384  ;;  %s2112_s7 = smov [#allocation6]  }
  0x2e   : > { %p1950_p0 = scmp.ne.s32.totalorder %s2224_s10, %s1949_s29  ;;  %s1954_s9 = sshll.u32 %s2112_s7, 4  ;;  %s1955_s9 = int_to_ptr.vmem [resolvable:$false] %s1954_s9 }
  0x2f   : > { %s1956_s22 = scalar_lea.vmem %s1955_s9, 32768  ;;  %p1957_p9 = scmp.lt.s32.totalorder %s2224_s10, %s1955_s9 }
  0x30   : > { %p1952_p2 = pnand %p1950_p0, %p2232_p1  ;;  %p1958_p8 = scmp.lt.s32.totalorder %s1956_s22, %s1949_s29 }
  0x32   : > { %p1953_p11 = pneg %p1952_p2  ;;  %p1959_p4 = por %p1958_p8, %p1957_p9 }
  0x34   : > { %p1960_p5 = pnand %p1959_p4, %p1953_p11 }
  0x36   : > { %1963 = shalt.err (!%p1960_p5)
}
  0x37   : > { %s2113_s19 = smov 256   ;;  %s2114_s23 = smov 16  }
  0x38   : > { %1680 = dma.hbm_to_vmem [thread:$0]  (!%p2214_p13), %s2222_s8, 16384, %s2224_s10, %s2226_s11, %s2113_s19, %s2113_s19, %s2114_s23  }
  0x39   : > { %p1514_p3 = scmp.ge.s32.totalorder %s2110_s17, 1  ;;  %p222_p6 = scmp.lt.s32.totalorder %s2110_s17, 7 }
  0x3a   : > { %s1505_s5 = sshll.u32 %s2208_s28, 2  ;;  %s1654_s6 = sshll.u32 %s2106_s16, 6 }
  0x3b   : > { %p2258_p8 = pnand %p1514_p3, %p222_p6  ;;  %s2551_s0 = sld [smem:[#allocation16_spill]] }
  0x3c   : > { %s164_s22 = scalar_lea.vmem [#allocation3], %s1505_s5  ;;  %s161_s10 = scalar_lea.sflag [#allocation4], %s2208_s28 }
  0x3d   : > { %s2550_s30 = scalar_select %p2258_p8, 1, 0 }
  0x3e   : > { %s174_s1 = sshll.u32 %s164_s22, 4  ;;  %s175_s1 = int_to_ptr.vmem [resolvable:$true] %s174_s1 }
  0x41   : > { %s2267_s9 = scalar_lea.hbm %s2551_s0, %s1654_s6  ;;  %s1969_s29 = scalar_lea.hbm %s2551_s0, 384 }
  0x42   : > { %s1964_s19 = scalar_lea.hbm %s2267_s9, 64  ;;  %p1970_p10 = scmp.lt.u32.totalorder %s2267_s9, %s2551_s0 }
  0x43   : > { %p1965_p9 = scmp.ne.s32.totalorder %s2267_s9, %s1964_s19  ;;  %p1971_p12 = scmp.lt.u32.totalorder %s1969_s29, %s1964_s19 }
  0x44   : > { %p1973_p2 = scmp.lt.u32.totalorder %s1964_s19, %s2267_s9 }
  0x45   : > { %p1967_p11 = pnand %p1965_p9, %p2232_p1  ;;  %p1972_p0 = por %p1971_p12, %p1970_p10 }
  0x47   : > { %p1968_p7 = pneg %p1967_p11  ;;  %p1974_p4 = por %p1973_p2, %p1972_p0 }
  0x49   : > { %p1975_p5 = pnand %p1974_p4, %p1968_p7 }
  0x4b   : > { %1978 = shalt.err (!%p1975_p5)
}
  0x4c   : > { %s1979_s5 = scalar_lea.vmem %s175_s1, 64  ;;  %s2115_s22 = smov [#allocation3]  }
  0x4d   : > { %p1980_p3 = scmp.ne.s32.totalorder %s175_s1, %s1979_s5  ;;  %s1984_s8 = sshll.u32 %s2115_s22, 4  ;;  %s1985_s8 = int_to_ptr.vmem [resolvable:$false] %s1984_s8 }
  0x4e   : > { %s1986_s20 = scalar_lea.vmem %s1985_s8, 128  ;;  %p1987_p11 = scmp.lt.s32.totalorder %s175_s1, %s1985_s8 }
  0x4f   : > { %p1982_p6 = pnand %p1980_p3, %p2232_p1  ;;  %p1988_p8 = scmp.lt.s32.totalorder %s1986_s20, %s1979_s5 }
  0x51   : > { %p1983_p9 = pneg %p1982_p6  ;;  %p1989_p13 = por %p1988_p8, %p1987_p11 }
  0x53   : > { %p1990_p10 = pnand %p1989_p13, %p1983_p9 }
  0x55   : > { %1993 = shalt.err (!%p1990_p10)
}
  0x56   : > { %p2552_p12 = scmp.ne.s32.totalorder %s2547_s4, 0  ;;  %s1656_s19 = sshll.u32 %s2106_s16, 7 }
  0x57   : > { %s2553_s23 = sshll.u32 %s2208_s28, 3  ;;  %s215_s0 = scalar_lea.hbm %s2530_s2, %s1656_s19 }
  0x58   : > { %1677 = dma.hbm_to_vmem [thread:$0]  (!%p2552_p12), %s2267_s9, 64, %s175_s1, %s161_s10  }
  0x59   : > { %s209_s29 = scalar_lea.vmem [#allocation8], %s2553_s23  ;;  %s1994_s8 = scalar_lea.hbm %s215_s0, 128 }
  0x5a   : > { %s217_s6 = sshll.u32 %s209_s29, 4  ;;  %p1995_p8 = scmp.ne.s32.totalorder %s215_s0, %s1994_s8  ;;  %s218_s6 = int_to_ptr.vmem [resolvable:$true] %s217_s6 }
  0x5b   : > { %s1999_s26 = scalar_lea.hbm %s2530_s2, 768  ;;  %p2000_p0 = scmp.lt.u32.totalorder %s215_s0, %s2530_s2 }
  0x5c   : > { %p1997_p13 = pnand %p1995_p8, %p2232_p1  ;;  %p2001_p2 = scmp.lt.u32.totalorder %s1999_s26, %s1994_s8 }
  0x5d   : > { %p2003_p5 = scmp.lt.u32.totalorder %s1994_s8, %s215_s0 }
  0x5e   : > { %p1998_p7 = pneg %p1997_p13  ;;  %p2002_p4 = por %p2001_p2, %p2000_p0 }
  0x60   : > { %p2004_p3 = por %p2003_p5, %p2002_p4 }
  0x62   : > { %p2005_p6 = pnand %p2004_p3, %p1998_p7 }
  0x64   : > { %2008 = shalt.err (!%p2005_p6)
}
  0x65   : > { %s2009_s28 = scalar_lea.vmem %s218_s6, 128  ;;  %s2116_s9 = smov [#allocation8]  }
  0x66   : > { %p2010_p9 = scmp.ne.s32.totalorder %s218_s6, %s2009_s28  ;;  %s2014_s10 = sshll.u32 %s2116_s9, 4  ;;  %s2015_s10 = int_to_ptr.vmem [resolvable:$false] %s2014_s10 }
  0x67   : > { %s2016_s19 = scalar_lea.vmem %s2015_s10, 256  ;;  %p2017_p8 = scmp.lt.s32.totalorder %s218_s6, %s2015_s10 }
  0x68   : > { %p2012_p11 = pnand %p2010_p9, %p2232_p1  ;;  %p2018_p13 = scmp.lt.s32.totalorder %s2016_s19, %s2009_s28 }
  0x6a   : > { %p2013_p10 = pneg %p2012_p11  ;;  %p2019_p12 = por %p2018_p13, %p2017_p8 }
  0x6c   : > { %p2020_p0 = pnand %p2019_p12, %p2013_p10 }
  0x6e   : > { %2023 = shalt.err (!%p2020_p0)
}
  0x6f   : > { %p2554_p2 = scmp.ne.s32.totalorder %s2547_s4, 0  ;;  %p2555_p7 = scmp.ne.s32.totalorder %s2550_s30, 0 }
  0x70   : > { %s2310_s14 = sand.u32 (!%p2555_p7), 1, %s2094_s13   ;;  %p2556_p1 = scmp.ne.s32.totalorder (!%p2555_p7), %s2543_s24, 0 }
  0x71   : > { %1683 = dma.hbm_to_vmem [thread:$0]  (!%p2554_p2), %s215_s0, 128, %s218_s6, %s2226_s11  }
  0x72   : > { %226 = sbr.rel (%p2555_p7) target bundleno = 493 (0x1ed), region = 32  ;;  %s1515_s26 = sshll.u32 (!%p2555_p7), %s2310_s14, 2 }
  0x73   : > { %s229_s21 = scalar_lea.sflag (!%p2555_p7), [#allocation4], %s2310_s14  ;;  %s2314_s23 = scalar_lea.vmem (!%p2555_p7), [#allocation3], %s1515_s26 }
  0x79   : > { %2077 = dma.done.wait (%p2556_p1), %s229_s21, 64  }
  0x7a   : > { %2079 = vsyncadd (%p2556_p1), %s229_s21, 4294967232  ;;  %s237_s0 = sand.u32 1, %s2171_s18   ;;  %s1516_s4 = sshll.u32 %s2310_s14, 10 }
  0x7b   : > { %s238_s11 = scalar_lea.sflag [#allocation7], %s237_s0  ;;  %s2322_s30 = scalar_lea.vmem [#allocation6], %s1516_s4 }
  0x7c   : > { %2081 = dma.done.wait (%p2556_p1), %s238_s11, 16512  }
  0x7d   : > { %2083 = vsyncadd (%p2556_p1), %s238_s11, 4294950784  ;;  %v1742_v0 = vld [vmem:[%s2322_s30 + $0x4] ss:$16 sps:$4 sm:$0xff]   ;;  %v1744_v1 = vld [vmem:[%s2322_s30 + $0xc] ss:$16 sps:$4 sm:$0xff]   ;;  %v433_v40 = vlaneseq  ;;  %s1517_s18 = sshll.u32 %s2310_s14, 3 }
  0x7e   : > { %1090 = vmatprep.subr.bf16.mxu0 %v1742_v0  ;;  %v1746_v2 = vld [vmem:[%s2322_s30] ss:$16 sps:$4 sm:$0xff]   ;;  %v1747_v3 = vld [vmem:[%s2322_s30 + $0x8] ss:$16 sps:$4 sm:$0xff]   ;;  %1172 = vmatprep.subr.bf16.mxu1 %v1744_v1  ;;  %v1748_v4 = vld [vmem:[%s2322_s30 + $0x24] ss:$16 sps:$4 sm:$0xff]  }
  0x7f   : > { %1091 = vmatpush1.bf16.msra.mxu0 %v1746_v2  ;;  %1173 = vmatpush1.bf16.msra.mxu1 %v1747_v3  ;;  %v1750_v5 = vld [vmem:[%s2322_s30 + $0x2c] ss:$16 sps:$4 sm:$0xff]   ;;  %v1752_v6 = vld [vmem:[%s2322_s30 + $0x20] ss:$16 sps:$4 sm:$0xff]   ;;  %v1753_v7 = vld [vmem:[%s2322_s30 + $0x28] ss:$16 sps:$4 sm:$0xff]  }
  0x80   : > { %1092 = vmatprep.subr.bf16.mxu0 %v1748_v4  ;;  %1174 = vmatprep.subr.bf16.mxu1 %v1750_v5  ;;  %v1754_v8 = vld [vmem:[%s2322_s30 + $0x44] ss:$16 sps:$4 sm:$0xff]   ;;  %v1756_v9 = vld [vmem:[%s2322_s30 + $0x4c] ss:$16 sps:$4 sm:$0xff]   ;;  %v1758_v10 = vld [vmem:[%s2322_s30 + $0x40] ss:$16 sps:$4 sm:$0xff]  }
  0x81   : > { %v1759_v11 = vld [vmem:[%s2322_s30 + $0x48] ss:$16 sps:$4 sm:$0xff]   ;;  %v1760_v12 = vld [vmem:[%s2322_s30 + $0x64] ss:$16 sps:$4 sm:$0xff]   ;;  %v1762_v13 = vld [vmem:[%s2322_s30 + $0x6c] ss:$16 sps:$4 sm:$0xff]  }
  0x82   : > { %v1764_v14 = vld [vmem:[%s2322_s30 + $0x60] ss:$16 sps:$4 sm:$0xff]   ;;  %v1765_v15 = vld [vmem:[%s2322_s30 + $0x68] ss:$16 sps:$4 sm:$0xff]   ;;  %v1766_v16 = vld [vmem:[%s2322_s30 + $0x84] ss:$16 sps:$4 sm:$0xff]  }
  0x83   : > { %1093 = vmatpush1.bf16.msra.mxu0 %v1752_v6  ;;  %1175 = vmatpush1.bf16.msra.mxu1 %v1753_v7  ;;  %v1768_v17 = vld [vmem:[%s2322_s30 + $0x8c] ss:$16 sps:$4 sm:$0xff]   ;;  %v1770_v18 = vld [vmem:[%s2322_s30 + $0x80] ss:$16 sps:$4 sm:$0xff]   ;;  %v1771_v19 = vld [vmem:[%s2322_s30 + $0x88] ss:$16 sps:$4 sm:$0xff]  }
  0x84   : > { %1094 = vmatprep.subr.bf16.mxu0 %v1754_v8  ;;  %1176 = vmatprep.subr.bf16.mxu1 %v1756_v9  ;;  %v1772_v20 = vld [vmem:[%s2322_s30 + $0xa4] ss:$16 sps:$4 sm:$0xff]   ;;  %v1774_v21 = vld [vmem:[%s2322_s30 + $0xac] ss:$16 sps:$4 sm:$0xff]   ;;  %v1776_v22 = vld [vmem:[%s2322_s30 + $0xa0] ss:$16 sps:$4 sm:$0xff]  }
  0x85   : > { %v1777_v23 = vld [vmem:[%s2322_s30 + $0xa8] ss:$16 sps:$4 sm:$0xff]   ;;  %v1778_v24 = vld [vmem:[%s2322_s30 + $0xc4] ss:$16 sps:$4 sm:$0xff]   ;;  %v1780_v25 = vld [vmem:[%s2322_s30 + $0xcc] ss:$16 sps:$4 sm:$0xff]  }
  0x86   : > { %v1782_v26 = vld [vmem:[%s2322_s30 + $0xc0] ss:$16 sps:$4 sm:$0xff]   ;;  %v1783_v27 = vld [vmem:[%s2322_s30 + $0xc8] ss:$16 sps:$4 sm:$0xff]   ;;  %v1784_v28 = vld [vmem:[%s2322_s30 + $0xe4] ss:$16 sps:$4 sm:$0xff]  }
  0x87   : > { %1095 = vmatpush1.bf16.msra.mxu0 %v1758_v10  ;;  %1177 = vmatpush1.bf16.msra.mxu1 %v1759_v11  ;;  %v1786_v29 = vld [vmem:[%s2322_s30 + $0xec] ss:$16 sps:$4 sm:$0xff]   ;;  %v1788_v30 = vld [vmem:[%s2322_s30 + $0xe0] ss:$16 sps:$4 sm:$0xff]   ;;  %v1789_v31 = vld [vmem:[%s2322_s30 + $0xe8] ss:$16 sps:$4 sm:$0xff]  }
  0x88   : > { %1096 = vmatprep.subr.bf16.mxu0 %v1760_v12  ;;  %1178 = vmatprep.subr.bf16.mxu1 %v1762_v13  ;;  %v1790_v32 = vld [vmem:[%s2322_s30 + $0x104] ss:$16 sps:$4 sm:$0xff]   ;;  %v1792_v33 = vld [vmem:[%s2322_s30 + $0x10c] ss:$16 sps:$4 sm:$0xff]   ;;  %v1794_v34 = vld [vmem:[%s2322_s30 + $0x100] ss:$16 sps:$4 sm:$0xff]  }
  0x89   : > { %v1795_v35 = vld [vmem:[%s2322_s30 + $0x108] ss:$16 sps:$4 sm:$0xff]   ;;  %v1796_v36 = vld [vmem:[%s2322_s30 + $0x124] ss:$16 sps:$4 sm:$0xff]   ;;  %v1798_v37 = vld [vmem:[%s2322_s30 + $0x12c] ss:$16 sps:$4 sm:$0xff]  }
  0x8a   : > { %v2117_v38 = vmov 1966171168   ;;  %v1800_v41 = vld [vmem:[%s2322_s30 + $0x120] ss:$16 sps:$4 sm:$0xff]   ;;  %v1801_v42 = vld [vmem:[%s2322_s30 + $0x128] ss:$16 sps:$4 sm:$0xff]  }
  0x8b   : > { %1097 = vmatpush1.bf16.msra.mxu0 %v1764_v14  ;;  %1179 = vmatpush1.bf16.msra.mxu1 %v1765_v15  ;;  %v431_v39 = vunpack.c.l.s4 %v2117_v38  ;;  %v1802_v43 = vld [vmem:[%s2322_s30 + $0x144] ss:$16 sps:$4 sm:$0xff]   ;;  %v1804_v44 = vld [vmem:[%s2322_s30 + $0x14c] ss:$16 sps:$4 sm:$0xff]   ;;  %v2370_v46 = vshrl.u32 %v433_v40, 7  ;;  %s250_s24 = scalar_lea.vmem [#allocation8], %s1517_s18 }
  0x8c   : > { %1098 = vmatprep.subr.bf16.mxu0 %v1766_v16  ;;  %1180 = vmatprep.subr.bf16.mxu1 %v1768_v17  ;;  %v1806_v47 = vld [vmem:[%s2322_s30 + $0x140] ss:$16 sps:$4 sm:$0xff]   ;;  %v1807_v48 = vld [vmem:[%s2322_s30 + $0x148] ss:$16 sps:$4 sm:$0xff]   ;;  %v1808_v49 = vld [vmem:[%s2322_s30 + $0x164] ss:$16 sps:$4 sm:$0xff]  }
  0x8d   : > { %v432_v45 = vunpack.c.0.s8 %v431_v39  ;;  %v1810_v50 = vld [vmem:[%s2322_s30 + $0x16c] ss:$16 sps:$4 sm:$0xff]   ;;  %v1812_v53 = vld [vmem:[%s2322_s30 + $0x160] ss:$16 sps:$4 sm:$0xff]   ;;  %v1813_v54 = vld [vmem:[%s2322_s30 + $0x168] ss:$16 sps:$4 sm:$0xff]  }
  0x8e   : > { %v1519_v52 = vld.sshfl [vmem:[%s2314_s23] sm:$0x33 pattern:$0x75316420]  ;;  %v1814_v56 = vld [vmem:[%s2322_s30 + $0x184] ss:$16 sps:$4 sm:$0xff]  }
  0x8f   : > { %1099 = vmatpush1.bf16.msra.mxu0 %v1770_v18  ;;  %1181 = vmatpush1.bf16.msra.mxu1 %v1771_v19  ;;  %v435_v51 = vsub.s32 %v432_v45, %v2370_v46  ;;  %v429_v55 = vcombine.high %v1519_v52, %v1519_v52  ;;  %v1816_v57 = vld [vmem:[%s2322_s30 + $0x18c] ss:$16 sps:$4 sm:$0xff]   ;;  %v1818_v59 = vld [vmem:[%s2322_s30 + $0x180] ss:$16 sps:$4 sm:$0xff]   ;;  %v1819_v60 = vld [vmem:[%s2322_s30 + $0x188] ss:$16 sps:$4 sm:$0xff]  }
  0x90   : > { %1100 = vmatprep.subr.bf16.mxu0 %v1772_v20  ;;  %1182 = vmatprep.subr.bf16.mxu1 %v1774_v21  ;;  %v1820_v61 = vld [vmem:[%s2322_s30 + $0x1a4] ss:$16 sps:$4 sm:$0xff]   ;;  %v1822_v62 = vld [vmem:[%s2322_s30 + $0x1ac] ss:$16 sps:$4 sm:$0xff]   ;;  %v1824_v63 = vld [vmem:[%s2322_s30 + $0x1a0] ss:$16 sps:$4 sm:$0xff]  }
  0x91   : > { %v443_v58 = vrot.slane %v429_v55, %v435_v51  ;;  %v1825_v0 = vld [vmem:[%s2322_s30 + $0x1a8] ss:$16 sps:$4 sm:$0xff]   ;;  %v1826_v1 = vld [vmem:[%s2322_s30 + $0x1c4] ss:$16 sps:$4 sm:$0xff]   ;;  %v1828_v2 = vld [vmem:[%s2322_s30 + $0x1cc] ss:$16 sps:$4 sm:$0xff]   ;;  %v2399_v12 = vrot.slane %v1519_v52, %v435_v51 }
  0x92   : > { %v1830_v3 = vld [vmem:[%s2322_s30 + $0x1c0] ss:$16 sps:$4 sm:$0xff]   ;;  %v1831_v4 = vld [vmem:[%s2322_s30 + $0x1c8] ss:$16 sps:$4 sm:$0xff]   ;;  %v1832_v5 = vld [vmem:[%s2322_s30 + $0x1e4] ss:$16 sps:$4 sm:$0xff]  }
  0x93   : > { %1101 = vmatpush1.bf16.msra.mxu0 %v1776_v22  ;;  %1183 = vmatpush1.bf16.msra.mxu1 %v1777_v23  ;;  %v1834_v6 = vld [vmem:[%s2322_s30 + $0x1ec] ss:$16 sps:$4 sm:$0xff]   ;;  %v1836_v7 = vld [vmem:[%s2322_s30 + $0x1e0] ss:$16 sps:$4 sm:$0xff]   ;;  %v1837_v8 = vld [vmem:[%s2322_s30 + $0x1e8] ss:$16 sps:$4 sm:$0xff]   ;;  %v445_v16 = vcombine.high %v443_v58, %v443_v58 }
  0x94   : > { %1102 = vmatprep.subr.bf16.mxu0 %v1778_v24  ;;  %1184 = vmatprep.subr.bf16.mxu1 %v1780_v25  ;;  %v1840_v9 = vld [vmem:[%s2322_s30 + $0x204] ss:$16 sps:$4 sm:$0xff]   ;;  %v1843_v10 = vld [vmem:[%s2322_s30 + $0x20c] ss:$16 sps:$4 sm:$0xff]   ;;  %v1838_v11 = vld [vmem:[%s2322_s30 + $0x200] ss:$16 sps:$4 sm:$0xff]  }
  0x95   : > { %1122 = vmatprep.mubr.bf16.mxu0 %v443_v58  ;;  %1204 = vmatprep.mubr.bf16.mxu1 %v443_v58  ;;  %v1841_v13 = vld [vmem:[%s2322_s30 + $0x208] ss:$16 sps:$4 sm:$0xff]   ;;  %v1846_v14 = vld [vmem:[%s2322_s30 + $0x224] ss:$16 sps:$4 sm:$0xff]   ;;  %v1849_v15 = vld [vmem:[%s2322_s30 + $0x22c] ss:$16 sps:$4 sm:$0xff]  }
  0x96   : > { %v1844_v17 = vld [vmem:[%s2322_s30 + $0x220] ss:$16 sps:$4 sm:$0xff]   ;;  %v1847_v18 = vld [vmem:[%s2322_s30 + $0x228] ss:$16 sps:$4 sm:$0xff]   ;;  %v1852_v19 = vld [vmem:[%s2322_s30 + $0x244] ss:$16 sps:$4 sm:$0xff]  }
  0x97   : > { %1103 = vmatpush1.bf16.msra.mxu0 %v1782_v26  ;;  %1185 = vmatpush1.bf16.msra.mxu1 %v1783_v27  ;;  %v1855_v20 = vld [vmem:[%s2322_s30 + $0x24c] ss:$16 sps:$4 sm:$0xff]   ;;  %v1850_v21 = vld [vmem:[%s2322_s30 + $0x240] ss:$16 sps:$4 sm:$0xff]   ;;  %v1853_v22 = vld [vmem:[%s2322_s30 + $0x248] ss:$16 sps:$4 sm:$0xff]  }
  0x98   : > { %1104 = vmatprep.subr.bf16.mxu0 %v1784_v28  ;;  %1186 = vmatprep.subr.bf16.mxu1 %v1786_v29  ;;  %v1858_v23 = vld [vmem:[%s2322_s30 + $0x264] ss:$16 sps:$4 sm:$0xff]   ;;  %v1861_v24 = vld [vmem:[%s2322_s30 + $0x26c] ss:$16 sps:$4 sm:$0xff]   ;;  %v1856_v25 = vld [vmem:[%s2322_s30 + $0x260] ss:$16 sps:$4 sm:$0xff]  }
  0x99   : > { %v1859_v26 = vld [vmem:[%s2322_s30 + $0x268] ss:$16 sps:$4 sm:$0xff]   ;;  %v1864_v27 = vld [vmem:[%s2322_s30 + $0x284] ss:$16 sps:$4 sm:$0xff]   ;;  %v1867_v28 = vld [vmem:[%s2322_s30 + $0x28c] ss:$16 sps:$4 sm:$0xff]  }
  0x9a   : > { %v1862_v29 = vld [vmem:[%s2322_s30 + $0x280] ss:$16 sps:$4 sm:$0xff]   ;;  %v1877_v38 = vld [vmem:[%s2322_s30 + $0x2c8] ss:$16 sps:$4 sm:$0xff]   ;;  %v1882_v39 = vld [vmem:[%s2322_s30 + $0x2e4] ss:$16 sps:$4 sm:$0xff]  }
  0x9b   : > { %1105 = vmatpush1.bf16.msra.mxu0 %v1788_v30  ;;  %1187 = vmatpush1.bf16.msra.mxu1 %v1789_v31  ;;  %v1865_v30 = vld [vmem:[%s2322_s30 + $0x288] ss:$16 sps:$4 sm:$0xff]   ;;  %v1870_v31 = vld [vmem:[%s2322_s30 + $0x2a4] ss:$16 sps:$4 sm:$0xff]   ;;  %v1885_v40 = vld [vmem:[%s2322_s30 + $0x2ec] ss:$16 sps:$4 sm:$0xff]  }
  0x9c   : > { %1106 = vmatprep.subr.bf16.mxu0 %v1790_v32  ;;  %1188 = vmatprep.subr.bf16.mxu1 %v1792_v33  ;;  %v1873_v32 = vld [vmem:[%s2322_s30 + $0x2ac] ss:$16 sps:$4 sm:$0xff]   ;;  %v1868_v33 = vld [vmem:[%s2322_s30 + $0x2a0] ss:$16 sps:$4 sm:$0xff]   ;;  %v1895_v51 = vld [vmem:[%s2322_s30 + $0x328] ss:$16 sps:$4 sm:$0xff]  }
  0x9d   : > { %v1886_v45 = vld [vmem:[%s2322_s30 + $0x300] ss:$16 sps:$4 sm:$0xff]   ;;  %v1900_v52 = vld [vmem:[%s2322_s30 + $0x344] ss:$16 sps:$4 sm:$0xff]   ;;  %v1901_v55 = vld [vmem:[%s2322_s30 + $0x348] ss:$16 sps:$4 sm:$0xff]  }
  0x9e   : > { %v1904_v58 = vld [vmem:[%s2322_s30 + $0x360] ss:$16 sps:$4 sm:$0xff]   ;;  %s1657_s29 = sshll.u32 %s2102_s15, 7  ;;  %s282_s6 = scalar_lea.vmem [#allocation9], %s1517_s18 }
  0x9f   : > { %1107 = vmatpush1.bf16.msra.mxu0 %v1794_v34  ;;  %1189 = vmatpush1.bf16.msra.mxu1 %v1795_v35  ;;  %v1871_v34 = vld [vmem:[%s2322_s30 + $0x2a8] ss:$16 sps:$4 sm:$0xff]   ;;  %v1876_v35 = vld [vmem:[%s2322_s30 + $0x2c4] ss:$16 sps:$4 sm:$0xff]   ;;  %s1374_s7 = sshll.u32 %s282_s6, 4  ;;  %s2480_s5 = scalar_lea.hbm %s2531_s3, %s1657_s29  ;;  %s2482_s7 = int_to_ptr.vmem [resolvable:$true] %s1374_s7 }
  0xa0   : > { %1108 = vmatprep.subr.bf16.mxu0 %v1796_v36  ;;  %1190 = vmatprep.subr.bf16.mxu1 %v1798_v37  ;;  %v1879_v36 = vld [vmem:[%s2322_s30 + $0x2cc] ss:$16 sps:$4 sm:$0xff]   ;;  %v1874_v37 = vld [vmem:[%s2322_s30 + $0x2c0] ss:$16 sps:$4 sm:$0xff]   ;;  %s1360_s20 = scalar_lea.sflag [#allocation5], %s2310_s14  ;;  %s2024_s1 = scalar_lea.vmem %s2482_s7, 128 }
  0xa1   : > { %p2025_p12 = scmp.ne.s32.totalorder %s2482_s7, %s2024_s1  ;;  %p2557_p4 = scmp.ne.s32.totalorder %s2544_s25, 0 }
  0xa2   : > { %s2119_s15 = smov [#allocation9]  }
  0xa3   : > { %1109 = vmatpush1.bf16.msra.mxu0 %v1800_v41  ;;  %1191 = vmatpush1.bf16.msra.mxu1 %v1801_v42  ;;  %v1880_v41 = vld [vmem:[%s2322_s30 + $0x2e0] ss:$16 sps:$4 sm:$0xff]   ;;  %v1883_v42 = vld [vmem:[%s2322_s30 + $0x2e8] ss:$16 sps:$4 sm:$0xff]   ;;  %p2026_p5 = pnand %p2025_p12, %p2557_p4  ;;  %s2028_s28 = sshll.u32 %s2119_s15, 4  ;;  %s2029_s28 = int_to_ptr.vmem [resolvable:$false] %s2028_s28 }
  0xa4   : > { %1110 = vmatprep.subr.bf16.mxu0 %v1802_v43  ;;  %1192 = vmatprep.subr.bf16.mxu1 %v1804_v44  ;;  %v1888_v43 = vld [vmem:[%s2322_s30 + $0x304] ss:$16 sps:$4 sm:$0xff]   ;;  %v1891_v44 = vld [vmem:[%s2322_s30 + $0x30c] ss:$16 sps:$4 sm:$0xff]   ;;  %s2030_s9 = scalar_lea.vmem %s2029_s28, 256  ;;  %p2031_p6 = scmp.lt.s32.totalorder %s2482_s7, %s2029_s28 }
  0xa5   : > { %p2027_p3 = pneg %p2026_p5  ;;  %p2032_p9 = scmp.lt.s32.totalorder %s2030_s9, %s2024_s1 }
  0xa7   : > { %1111 = vmatpush1.bf16.msra.mxu0 %v1806_v47  ;;  %1193 = vmatpush1.bf16.msra.mxu1 %v1807_v48  ;;  %v1889_v47 = vld [vmem:[%s2322_s30 + $0x308] ss:$16 sps:$4 sm:$0xff]   ;;  %v1894_v48 = vld [vmem:[%s2322_s30 + $0x324] ss:$16 sps:$4 sm:$0xff]   ;;  %p2033_p11 = por %p2032_p9, %p2031_p6 }
  0xa8   : > { %1112 = vmatprep.subr.bf16.mxu0 %v1808_v49  ;;  %1194 = vmatprep.subr.bf16.mxu1 %v1810_v50  ;;  %v1897_v49 = vld [vmem:[%s2322_s30 + $0x32c] ss:$16 sps:$4 sm:$0xff]   ;;  %v1892_v50 = vld [vmem:[%s2322_s30 + $0x320] ss:$16 sps:$4 sm:$0xff]  }
  0xa9   : > { %p2034_p10 = pnand %p2033_p11, %p2027_p3 }
  0xab   : > { %1113 = vmatpush1.bf16.msra.mxu0 %v1812_v53  ;;  %1195 = vmatpush1.bf16.msra.mxu1 %v1813_v54  ;;  %v1903_v53 = vld [vmem:[%s2322_s30 + $0x34c] ss:$16 sps:$4 sm:$0xff]   ;;  %v1898_v54 = vld [vmem:[%s2322_s30 + $0x340] ss:$16 sps:$4 sm:$0xff]  }
  0xac   : > { %1114 = vmatprep.subr.bf16.mxu0 %v1814_v56  ;;  %1196 = vmatprep.subr.bf16.mxu1 %v1816_v57  ;;  %v1906_v56 = vld [vmem:[%s2322_s30 + $0x364] ss:$16 sps:$4 sm:$0xff]   ;;  %v1909_v57 = vld [vmem:[%s2322_s30 + $0x36c] ss:$16 sps:$4 sm:$0xff]  }
  0xaf   : > { %1115 = vmatpush1.bf16.msra.mxu0 %v1818_v59  ;;  %1197 = vmatpush1.bf16.msra.mxu1 %v1819_v60  ;;  %v1907_v59 = vld [vmem:[%s2322_s30 + $0x368] ss:$16 sps:$4 sm:$0xff]   ;;  %v1912_v60 = vld [vmem:[%s2322_s30 + $0x384] ss:$16 sps:$4 sm:$0xff]  }
  0xb0   : > { %1116 = vmatprep.subr.bf16.mxu0 %v1820_v61  ;;  %1198 = vmatprep.subr.bf16.mxu1 %v1822_v62  ;;  %v1915_v61 = vld [vmem:[%s2322_s30 + $0x38c] ss:$16 sps:$4 sm:$0xff]   ;;  %v1910_v62 = vld [vmem:[%s2322_s30 + $0x380] ss:$16 sps:$4 sm:$0xff]  }
  0xb3   : > { %1117 = vmatpush1.bf16.msra.mxu0 %v1824_v63  ;;  %1199 = vmatpush1.bf16.msra.mxu1 %v1825_v0  ;;  %v1913_v63 = vld [vmem:[%s2322_s30 + $0x388] ss:$16 sps:$4 sm:$0xff]   ;;  %v1918_v0 = vld [vmem:[%s2322_s30 + $0x3a4] ss:$16 sps:$4 sm:$0xff]  }
  0xb4   : > { %1118 = vmatprep.subr.bf16.mxu0 %v1826_v1  ;;  %1200 = vmatprep.subr.bf16.mxu1 %v1828_v2  ;;  %v1921_v1 = vld [vmem:[%s2322_s30 + $0x3ac] ss:$16 sps:$4 sm:$0xff]   ;;  %v1916_v2 = vld [vmem:[%s2322_s30 + $0x3a0] ss:$16 sps:$4 sm:$0xff]  }
  0xb7   : > { %1119 = vmatpush1.bf16.msra.mxu0 %v1830_v3  ;;  %1201 = vmatpush1.bf16.msra.mxu1 %v1831_v4  ;;  %v1919_v3 = vld [vmem:[%s2322_s30 + $0x3a8] ss:$16 sps:$4 sm:$0xff]   ;;  %v1924_v4 = vld [vmem:[%s2322_s30 + $0x3c4] ss:$16 sps:$4 sm:$0xff]  }
  0xb8   : > { %1120 = vmatprep.subr.bf16.mxu0 %v1832_v5  ;;  %1202 = vmatprep.subr.bf16.mxu1 %v1834_v6  ;;  %v1927_v5 = vld [vmem:[%s2322_s30 + $0x3cc] ss:$16 sps:$4 sm:$0xff]   ;;  %v1922_v6 = vld [vmem:[%s2322_s30 + $0x3c0] ss:$16 sps:$4 sm:$0xff]  }
  0xbb   : > { %1121 = vmatpush1.bf16.msra.mxu0 %v1836_v7  ;;  %1203 = vmatpush1.bf16.msra.mxu1 %v1837_v8  ;;  %v1925_v7 = vld [vmem:[%s2322_s30 + $0x3c8] ss:$16 sps:$4 sm:$0xff]   ;;  %v1930_v8 = vld [vmem:[%s2322_s30 + $0x3e4] ss:$16 sps:$4 sm:$0xff]  }
  0xbc   : > { %1131 = vmatprep.subr.bf16.mxu0 %v1840_v9  ;;  %1213 = vmatprep.subr.bf16.mxu1 %v1843_v10  ;;  %v1933_v9 = vld [vmem:[%s2322_s30 + $0x3ec] ss:$16 sps:$4 sm:$0xff]   ;;  %v1928_v10 = vld [vmem:[%s2322_s30 + $0x3e0] ss:$16 sps:$4 sm:$0xff]  }
  0xbe   : > { %1123 = vmatmul.mubr.bf16.vlgmr.msra.gmra.mrb[0].mxu0 %v2399_v12  ;;  %1205 = vmatmul.mubr.bf16.vlgmr.msra.gmra.mrb[0].mxu1 %v2399_v12 }
  0xbf   : > { %1132 = vmatpush1.bf16.msra.mxu0 %v1838_v11  ;;  %1214 = vmatpush1.bf16.msra.mxu1 %v1841_v13  ;;  %v1931_v11 = vld [vmem:[%s2322_s30 + $0x3e8] ss:$16 sps:$4 sm:$0xff]   ;;  %v444_v13 = vcombine.high %v2399_v12, %v2399_v12 }
  0xc0   : > { %1133 = vmatprep.subr.bf16.mxu0 %v1846_v14  ;;  %1215 = vmatprep.subr.bf16.mxu1 %v1849_v15  ;;  %v2118_v14 = vmov 1983009808   ;;  %v1648_v12 = vld [vmem:[%s250_s24 + $0x1] ss:$2 sm:$0xf] }
  0xc1   : > { %1163 = vmatprep.mubr.bf16.mxu0 %v445_v16  ;;  %1245 = vmatprep.mubr.bf16.mxu1 %v445_v16  ;;  %v1261_v15 = vunpack.c.l.s4 %v2118_v14  ;;  %v1288_v16 = vsub.s32 0, %v2370_v46 }
  0xc3   : > { %1134 = vmatpush1.bf16.msra.mxu0 %v1844_v17  ;;  %1216 = vmatpush1.bf16.msra.mxu1 %v1847_v18  ;;  %v1292_v17 = vsub.s32 1, %v2370_v46  ;;  %v1296_v18 = vsub.s32 2, %v2370_v46 }
  0xc4   : > { %1135 = vmatprep.subr.bf16.mxu0 %v1852_v19  ;;  %1217 = vmatprep.subr.bf16.mxu1 %v1855_v20  ;;  %v1300_v19 = vsub.s32 3, %v2370_v46  ;;  %v1281_v20 = vld [vmem:[%s250_s24] ss:$2 sm:$0xf] }
  0xc7   : > { %1136 = vmatpush1.bf16.msra.mxu0 %v1850_v21  ;;  %1218 = vmatpush1.bf16.msra.mxu1 %v1853_v22  ;;  %v1262_v21 = vunpack.c.0.s8 %v1261_v15  ;;  %v1289_v22 = vrot.slane %v1281_v20, %v1288_v16 }
  0xc8   : > { %1137 = vmatprep.subr.bf16.mxu0 %v1858_v23  ;;  %1219 = vmatprep.subr.bf16.mxu1 %v1861_v24  ;;  %v1293_v23 = vrot.slane %v1281_v20, %v1292_v17  ;;  %v1297_v24 = vrot.slane %v1281_v20, %v1296_v18 }
  0xcb   : > { %1138 = vmatpush1.bf16.msra.mxu0 %v1856_v25  ;;  %1220 = vmatpush1.bf16.msra.mxu1 %v1859_v26  ;;  %v1301_v25 = vrot.slane %v1281_v20, %v1300_v19  ;;  %v1325_v26 = vrot.slane %v1648_v12, %v1288_v16 }
  0xcc   : > { %1139 = vmatprep.subr.bf16.mxu0 %v1864_v27  ;;  %1221 = vmatprep.subr.bf16.mxu1 %v1867_v28  ;;  %v1329_v27 = vrot.slane %v1648_v12, %v1292_v17  ;;  %v1333_v28 = vrot.slane %v1648_v12, %v1296_v18 }
  0xcf   : > { %1140 = vmatpush1.bf16.msra.mxu0 %v1862_v29  ;;  %1222 = vmatpush1.bf16.msra.mxu1 %v1865_v30  ;;  %v1337_v29 = vrot.slane %v1648_v12, %v1300_v19  ;;  %v1265_v30 = vsub.s32 %v1262_v21, %v2370_v46 }
  0xd0   : > { %1141 = vmatprep.subr.bf16.mxu0 %v1870_v31  ;;  %1223 = vmatprep.subr.bf16.mxu1 %v1873_v32  ;;  %v1302_v31 = vcombine.low %v1289_v22, %v1293_v23  ;;  %v1303_v32 = vcombine.low %v1297_v24, %v1301_v25 }
  0xd3   : > { %1142 = vmatpush1.bf16.msra.mxu0 %v1868_v33  ;;  %1224 = vmatpush1.bf16.msra.mxu1 %v1871_v34  ;;  %v1338_v33 = vcombine.low %v1325_v26, %v1329_v27  ;;  %v1339_v34 = vcombine.low %v1333_v28, %v1337_v29 }
  0xd4   : > { %1143 = vmatprep.subr.bf16.mxu0 %v1876_v35  ;;  %1225 = vmatprep.subr.bf16.mxu1 %v1879_v36 }
  0xd7   : > { %1144 = vmatpush1.bf16.msra.mxu0 %v1874_v37  ;;  %1226 = vmatpush1.bf16.msra.mxu1 %v1877_v38  ;;  %v1310_v37 = vrot.slane %v1302_v31, %v1265_v30  ;;  %v1317_v38 = vrot.slane %v1303_v32, %v1265_v30 }
  0xd8   : > { %1145 = vmatprep.subr.bf16.mxu0 %v1882_v39  ;;  %1227 = vmatprep.subr.bf16.mxu1 %v1885_v40 }
  0xdb   : > { %1146 = vmatpush1.bf16.msra.mxu0 %v1880_v41  ;;  %1228 = vmatpush1.bf16.msra.mxu1 %v1883_v42 }
  0xdc   : > { %1147 = vmatprep.subr.bf16.mxu0 %v1888_v43  ;;  %1229 = vmatprep.subr.bf16.mxu1 %v1891_v44  ;;  %v1346_v43 = vrot.slane %v1338_v33, %v1265_v30  ;;  %v1353_v44 = vrot.slane %v1339_v34, %v1265_v30 }
  0xdf   : > { %1148 = vmatpush1.bf16.msra.mxu0 %v1886_v45  ;;  %1230 = vmatpush1.bf16.msra.mxu1 %v1889_v47 }
  0xe0   : > { %1149 = vmatprep.subr.bf16.mxu0 %v1894_v48  ;;  %1231 = vmatprep.subr.bf16.mxu1 %v1897_v49 }
  0xe3   : > { %1150 = vmatpush1.bf16.msra.mxu0 %v1892_v50  ;;  %1232 = vmatpush1.bf16.msra.mxu1 %v1895_v51  ;;  %v1318_v51 = vcombine.low %v1310_v37, %v1317_v38 }
  0xe4   : > { %1151 = vmatprep.subr.bf16.mxu0 %v1900_v52  ;;  %1233 = vmatprep.subr.bf16.mxu1 %v1903_v53  ;;  %v1354_v53 = vcombine.low %v1346_v43, %v1353_v44 }
  0xe7   : > { %1152 = vmatpush1.bf16.msra.mxu0 %v1898_v54  ;;  %1234 = vmatpush1.bf16.msra.mxu1 %v1901_v55 }
  0xe8   : > { %1153 = vmatprep.subr.bf16.mxu0 %v1906_v56  ;;  %1235 = vmatprep.subr.bf16.mxu1 %v1909_v57 }
  0xeb   : > { %1154 = vmatpush1.bf16.msra.mxu0 %v1904_v58  ;;  %1236 = vmatpush1.bf16.msra.mxu1 %v1907_v59 }
  0xec   : > { %1155 = vmatprep.subr.bf16.mxu0 %v1912_v60  ;;  %1237 = vmatprep.subr.bf16.mxu1 %v1915_v61 }
  0xef   : > { %1156 = vmatpush1.bf16.msra.mxu0 %v1910_v62  ;;  %1238 = vmatpush1.bf16.msra.mxu1 %v1913_v63 }
  0xf0   : > { %1157 = vmatprep.subr.bf16.mxu0 %v1918_v0  ;;  %1239 = vmatprep.subr.bf16.mxu1 %v1921_v1 }
  0xf3   : > { %1158 = vmatpush1.bf16.msra.mxu0 %v1916_v2  ;;  %1240 = vmatpush1.bf16.msra.mxu1 %v1919_v3 }
  0xf4   : > { %1159 = vmatprep.subr.bf16.mxu0 %v1924_v4  ;;  %1241 = vmatprep.subr.bf16.mxu1 %v1927_v5 }
  0xf7   : > { %1160 = vmatpush1.bf16.msra.mxu0 %v1922_v6  ;;  %1242 = vmatpush1.bf16.msra.mxu1 %v1925_v7 }
  0xf8   : > { %1161 = vmatprep.subr.bf16.mxu0 %v1930_v8  ;;  %1243 = vmatprep.subr.bf16.mxu1 %v1933_v9 }
  0xfb   : > { %1162 = vmatpush1.bf16.msra.mxu0 %v1928_v10  ;;  %1244 = vmatpush1.bf16.msra.mxu1 %v1931_v11 }
  0xfe   : > { %1164 = vmatmul.mubr.bf16.vlgmr.msra.gmra.mrb[0].mxu0 %v444_v13  ;;  %1246 = vmatmul.mubr.bf16.vlgmr.msra.gmra.mrb[0].mxu1 %v444_v13 }
 0x1d1   : > { %v1165_v35 = vpop.f32.mrb[0].mxu0  ;;  %v1247_v36 = vpop.f32.mrb[0].mxu1 }
 0x1d2   : > { %v1167_v39 = vpop.f32.mrb[1].mxu0  ;;  %v1249_v40 = vpop.f32.mrb[1].mxu1 }
 0x1d3   : > { %v1258_v41 = vcombine.low %v1165_v35, %v1167_v39  ;;  %v1259_v42 = vcombine.low %v1247_v36, %v1249_v40  ;;  %v1169_v45 = vpop.f32.mrb[2].mxu0  ;;  %v1251_v47 = vpop.f32.mrb[2].mxu1 }
 0x1d4   : > { %v1170_v48 = vpop.f32.mrb[3].mxu0  ;;  %v1252_v46 = vpop.f32.mrb[3].mxu1 }
 0x1d5   : > { %v1266_v49 = vrot.slane %v1258_v41, %v1265_v30  ;;  %v1273_v50 = vrot.slane %v1259_v42, %v1265_v30 }
 0x1d7   : > { %v1274_v52 = vcombine.low %v1266_v49, %v1273_v50 }
 0x1d9   : > { %v1320_v54 = vmul.f32 %v1318_v51, %v1274_v52 }
 0x1db   : > { %v1356_v55 = vadd.f32 %v1354_v53, %v1320_v54 }
 0x1dd   : > { %v1357_v56 = vmax.f32 %v1356_v55, 0.0 }
 0x1df   : > { %1358 = vst [vmem:[%s282_s6] sm:$0xff] %v1357_v56 }
 0x1e0   : > { %2037 = shalt.err (!%p2034_p10)
}
 0x1e1   : > { %s2038_s10 = scalar_lea.hbm %s2480_s5, 128  ;;  %s2042_s26 = scalar_lea.hbm %s2531_s3, 768 }
 0x1e2   : > { %p2039_p8 = scmp.ne.s32.totalorder %s2480_s5, %s2038_s10  ;;  %p2043_p2 = scmp.lt.u32.totalorder %s2480_s5, %s2531_s3 }
 0x1e3   : > { %p2044_p7 = scmp.lt.u32.totalorder %s2042_s26, %s2038_s10  ;;  %p2046_p12 = scmp.lt.u32.totalorder %s2038_s10, %s2480_s5 }
 0x1e4   : > { %p2040_p13 = pnand %p2039_p8, %p2557_p4 }
 0x1e5   : > { %p2045_p1 = por %p2044_p7, %p2043_p2 }
 0x1e6   : > { %p2041_p0 = pneg %p2040_p13 }
 0x1e7   : > { %p2047_p5 = por %p2046_p12, %p2045_p1 }
 0x1e9   : > { %p2048_p3 = pnand %p2047_p5, %p2041_p0 }
 0x1eb   : > { %2051 = shalt.err (!%p2048_p3)
}
 0x1ec   : > { %1672 = dma.vmem_to_hbm [thread:$0]  (%p2557_p4), %s2482_s7, 128, %s2480_s5, %s1360_s20  }
 0x1ed PF: > { %p1689_p6 = scmp.ge.s32.totalorder %s2110_s17, 2  ;;  %s1386_s0 = sand.u32 1, %s2090_s12  }
 0x1ee   : > { %p2558_p9 = scmp.ne.s32.totalorder %s2546_s27, 0  ;;  %s1387_s4 = scalar_lea.sflag [#allocation5], %s1386_s0 }
 0x1f0   : > { %p1685_p11 = pnand %p1689_p6, %p2558_p9 }
 0x1f2   : > { %2085 = dma.done.wait (!%p1685_p11), %s1387_s4, 128  }
 0x1f3   : > { %2087 = vsyncadd (!%p1685_p11), %s1387_s4, 4294967168  ;;  %s22_s17 = sadd.s32 1, %s2110_s17   ;;  %s2559_s11 = sld [smem:[#allocation13_spill]] }
 0x1f4   : > { %p19_p10 = scmp.ge.s32.totalorder %s22_s17, 8   ;;  %s2560_s14 = sld [smem:[#allocation15_spill]] }
 0x1f5   : > { %s2561_s25 = sld [smem:[#allocation14_spill]]  ;;  %s2562_s12 = smov %s2094_s13 }
 0x1f6   : > { %s2564_s15 = smov %s2106_s16  ;;  %21 = sbr.rel (!%p19_p10) target bundleno = 11 (0xb), region = 110 }
 0x1f9   : > { %s2563_s13 = smov %s2559_s11 }
 0x1fb   : > { %s2565_s16 = smov %s2561_s25 }
 0x1fd   :  { %1392 = vsyncpa [#allocation4], 1 }
 0x1fe   :  { %1394 = vsyncpa [#allocation4 + $0x1], 1 }
 0x1ff   :  { %1395 = vsyncpa [#allocation7], 1 }
 0x200   :  { %1397 = vsyncpa [#allocation7 + $0x1], 1 }
 0x201   :  { %1398 = vsyncpa [#allocation5], 1 }
 0x202   :  { %1400 = vsyncpa [#allocation5 + $0x1], 1 }

</bundles_post_ra>
